<compile_context>
chip_gen: v5e
topology: v5e:2x2
jax: 0.10.0
libtpu: 0.0.40
codegen_flags: <defaults>
</compile_context>

<pallas_src>
import functools

import jax
import jax.numpy as jnp
from jax.experimental import pallas as pl
from jax.experimental.pallas import tpu as pltpu

_LANE = 128      # lane width: pad all feature dims to a multiple of this
_SUBLANE = 8     # f32 sublane granularity for the batch tile


def _round_up(n, m):
    return ((n + m - 1) // m) * m


def _encoder_kernel(x_ref, w1_ref, b1_ref, w2_ref, b2_ref, w3_ref, b3_ref, o_ref):
    # Fused 3-layer MLP on one TB-row batch tile:
    # three MXU matmuls (operands in weight dtype, f32 accumulate) with
    # f32 bias+ReLU epilogues. x may arrive in its native dtype (cast here).
    x = x_ref[...].astype(w1_ref.dtype)
    h1 = jnp.dot(x, w1_ref[...], preferred_element_type=jnp.float32) + b1_ref[...]
    h1 = jnp.maximum(h1, 0.0)
    h2 = jnp.dot(h1.astype(w2_ref.dtype), w2_ref[...],
                 preferred_element_type=jnp.float32) + b2_ref[...]
    h2 = jnp.maximum(h2, 0.0)
    y = jnp.dot(h2.astype(w3_ref.dtype), w3_ref[...],
                preferred_element_type=jnp.float32) + b3_ref[...]
    y = jnp.maximum(y, 0.0)
    o_ref[...] = y.astype(o_ref.dtype)


def prepare_params(params, *, compute_dtype=jnp.bfloat16):
    """Pad feature dims to 128-lane multiples and cast weights ONCE.

    Call outside jit and cache the result across forward calls so the
    pad/cast HBM pass is not repeated every step.
    params = (w1, b1, w2, b2, w3, b3), wi: (in, out), bi: (1, out).
    Returns (padded_params, (D_in, D_out)).
    """
    w1, b1, w2, b2, w3, b3 = params
    D_in, H1 = w1.shape
    H2, D_out = w2.shape[1], w3.shape[1]
    Dp, H1p, H2p, Dop = (_round_up(d, _LANE) for d in (D_in, H1, H2, D_out))

    def pad2(a, rows, cols):
        return jnp.pad(a, ((0, rows - a.shape[0]), (0, cols - a.shape[1])))

    # Weights in compute_dtype (bf16 -> full MXU rate, half the HBM bytes).
    # Biases stay f32 (the epilogue math is f32).
    # TODO(synk): on v7x, fp8 weight storage would halve resident-weight VMEM
    # further if the accuracy budget allows.
    w1p = pad2(w1, Dp, H1p).astype(compute_dtype)
    w2p = pad2(w2, H1p, H2p).astype(compute_dtype)
    w3p = pad2(w3, H2p, Dop).astype(compute_dtype)
    b1p = pad2(b1, 1, H1p).astype(jnp.float32)
    b2p = pad2(b2, 1, H2p).astype(jnp.float32)
    b3p = pad2(b3, 1, Dop).astype(jnp.float32)
    return (w1p, b1p, w2p, b2p, w3p, b3p), (D_in, D_out)


def deep_autoencoder_forward(x, w1p, b1p, w2p, b2p, w3p, b3p, *,
                             d_out, out_dtype=None, block_batch=512,
                             vmem_budget_bytes=48 * 1024 * 1024):
    """Encoder forward on pre-padded params (see prepare_params)."""
    B, D_in = x.shape
    Dp, H1p = w1p.shape
    H2p = w2p.shape[1]
    Dop = w3p.shape[1]
    compute_dtype = w1p.dtype
    out_dtype = x.dtype if out_dtype is None else out_dtype

    c_bytes = jnp.dtype(compute_dtype).itemsize
    o_bytes = jnp.dtype(out_dtype).itemsize
    feat_pad = (Dp != D_in)
    x_stream_bytes = c_bytes if feat_pad else jnp.dtype(x.dtype).itemsize

    # ---- Tile-size derivation from a VMEM budget that fits every generation.
    # Resident weights are single-buffered (pl.Buffered(1)); streamed x / y are
    # double-buffered; h1/h2/y intermediates are f32.
    weight_bytes = ((w1p.size + w2p.size + w3p.size) * c_bytes
                    + (b1p.size + b2p.size + b3p.size) * 4)
    per_row_bytes = (2 * Dp * x_stream_bytes
                     + 2 * Dop * o_bytes
                     + (H1p + H2p + Dop) * 4)
    max_tb = max(_SUBLANE,
                 ((vmem_budget_bytes - weight_bytes) // per_row_bytes
                  // _SUBLANE) * _SUBLANE)
    TB = max(_SUBLANE, min(_round_up(min(block_batch, B), _SUBLANE), max_tb))
    # Guarantee >=2 grid steps so megacore ("parallel") on v7x has work for
    # both TensorCores (no-op when B already spans multiple tiles).
    if B > _SUBLANE and _round_up(B, _SUBLANE) <= TB:
        TB = _round_up((B + 1) // 2, _SUBLANE)
    Bp = _round_up(B, TB)
    grid = (Bp // TB,)

    # ---- Minimal wrapper-side HBM traffic: pad+cast x only when required.
    batch_pad = (Bp != B)
    if feat_pad or batch_pad:
        xp = jnp.pad(x, ((0, Bp - B), (0, Dp - D_in))).astype(compute_dtype)
    else:
        xp = x   # streamed natively; cast to compute_dtype inside the kernel

    est_vmem = (weight_bytes
                + 2 * TB * Dp * jnp.dtype(xp.dtype).itemsize
                + 2 * TB * Dop * o_bytes
                + TB * (H1p + H2p + Dop) * 4)
    vmem_limit = int(min(max(32 * 1024 * 1024, int(est_vmem * 1.3)),
                         60 * 1024 * 1024))

    flops = 2 * Bp * (Dp * H1p + H1p * H2p + H2p * Dop)
    bytes_accessed = (xp.size * jnp.dtype(xp.dtype).itemsize
                      + weight_bytes
                      + Bp * Dop * o_bytes)
    cost = pl.CostEstimate(flops=flops, transcendentals=0,
                           bytes_accessed=bytes_accessed)

    resident = functools.partial(pl.BlockSpec, index_map=lambda i: (0, 0),
                                 pipeline_mode=pl.Buffered(1))

    out = pl.pallas_call(
        _encoder_kernel,
        out_shape=jax.ShapeDtypeStruct((Bp, Dop), out_dtype),
        grid_spec=pltpu.PrefetchScalarGridSpec(
            num_scalar_prefetch=0,
            grid=grid,
            in_specs=[
                # streamed batch tile of x (double-buffered by default)
                pl.BlockSpec((TB, Dp), lambda i: (i, 0)),
                # VMEM-resident, single-buffered weights / biases
                resident((Dp, H1p)),
                resident((1, H1p)),
                resident((H1p, H2p)),
                resident((1, H2p)),
                resident((H2p, Dop)),
                resident((1, Dop)),
            ],
            out_specs=pl.BlockSpec((TB, Dop), lambda i: (i, 0)),
        ),
        compiler_params=pltpu.CompilerParams(
            dimension_semantics=("parallel",),   # megacore on v7x, no-op elsewhere
            vmem_limit_bytes=vmem_limit,
        ),
        cost_estimate=cost,
    )(xp, w1p, b1p, w2p, b2p, w3p, b3p)

    # Strip batch/lane padding only when padding was actually applied.
    if Bp == B and Dop == d_out:
        return out
    return out[:B, :d_out]


def init_params(key, D_in, H1, H2, D_out, dtype=jnp.float32):
    """nn.Linear-style init U(-1/sqrt(fan_in), +1/sqrt(fan_in)); weights stored (in, out)."""
    def linear(key, fan_in, fan_out):
        kw, kb = jax.random.split(key)
        bound = 1.0 / jnp.sqrt(fan_in)
        w = jax.random.uniform(kw, (fan_in, fan_out), dtype, -bound, bound)
        b = jax.random.uniform(kb, (1, fan_out), dtype, -bound, bound)
        return w, b

    k1, k2, k3 = jax.random.split(key, 3)
    w1, b1 = linear(k1, D_in, H1)
    w2, b2 = linear(k2, H1, H2)
    w3, b3 = linear(k3, H2, D_out)
    return (w1, b1, w2, b2, w3, b3)


def _reference_forward(x, params):
    w1, b1, w2, b2, w3, b3 = params
    h1 = jnp.maximum(x @ w1 + b1, 0.0)
    h2 = jnp.maximum(h1 @ w2 + b2, 0.0)
    return jnp.maximum(h2 @ w3 + b3, 0.0)


if __name__ == "__main__":
    # Small shapes consistent with DeepAutoencoder(D_in, H1, H2, D_out).
    # B=64 exercises the >=2-step pipelined / megacore-sharded batch grid.
    B, D_in, H1, H2, D_out = 64, 32, 64, 32, 16

    key = jax.random.PRNGKey(0)
    k_params, k_x = jax.random.split(key)
    params = init_params(k_params, D_in, H1, H2, D_out)
    x = jax.random.normal(k_x, (B, D_in), jnp.float32)

    y_ref = _reference_forward(x, params)

    # f32 operand path: tight check against the plain-JAX reference.
    p32, (_, d_out) = prepare_params(params, compute_dtype=jnp.float32)
    fwd_f32 = jax.jit(functools.partial(deep_autoencoder_forward, d_out=d_out))
    y32 = jax.block_until_ready(fwd_f32(x, *p32))
    assert y32.shape == (B, D_out)
    assert jnp.allclose(y32, y_ref, atol=1e-5, rtol=1e-5)

    # bf16 operand / f32 accumulate path (default, MXU-rate): loose tolerance.
    # Params prepared (padded + cast) ONCE and reused across calls.
    p16, _ = prepare_params(params, compute_dtype=jnp.bfloat16)
    fwd_bf16 = jax.jit(functools.partial(deep_autoencoder_forward, d_out=d_out))
    y16 = jax.block_until_ready(fwd_bf16(x, *p16))
    assert y16.shape == (B, D_out)
    assert jnp.allclose(y16, y_ref, atol=5e-2, rtol=5e-2)
    # Second call reuses the prepared params (no wrapper pad/cast HBM pass).
    y16b = jax.block_until_ready(fwd_bf16(x, *p16))
    assert jnp.allclose(y16b, y16)

    print("KERNEL_OK")
</pallas_src>

<mosaic_0001>
module attributes {stable_mosaic.version = 11 : i64} {
  func.func @_encoder_kernel(%arg0: i32, %arg1: memref<32x128xf32, #tpu.memory_space<vmem>>, %arg2: memref<128x128xf32, #tpu.memory_space<vmem>>, %arg3: memref<1x128xf32, #tpu.memory_space<vmem>>, %arg4: memref<128x128xf32, #tpu.memory_space<vmem>>, %arg5: memref<1x128xf32, #tpu.memory_space<vmem>>, %arg6: memref<128x128xf32, #tpu.memory_space<vmem>>, %arg7: memref<1x128xf32, #tpu.memory_space<vmem>>, %arg8: memref<32x128xf32, #tpu.memory_space<vmem>>) attributes {dimension_semantics = [#tpu.dimension_semantics<parallel>], iteration_bounds = array<i64: 2>, scalar_prefetch = 0 : i64, scratch_operands = 0 : i64, tpu.core_type = #tpu.core_type<tc>, window_params = [{transform_indices = @transform_0, window_bounds = array<i64: 32, 128>}, {pipeline_mode = #tpu.pipeline_mode<synchronous>, transform_indices = @transform_1, window_bounds = array<i64: 128, 128>}, {pipeline_mode = #tpu.pipeline_mode<synchronous>, transform_indices = @transform_2, window_bounds = array<i64: 1, 128>}, {pipeline_mode = #tpu.pipeline_mode<synchronous>, transform_indices = @transform_3, window_bounds = array<i64: 128, 128>}, {pipeline_mode = #tpu.pipeline_mode<synchronous>, transform_indices = @transform_4, window_bounds = array<i64: 1, 128>}, {pipeline_mode = #tpu.pipeline_mode<synchronous>, transform_indices = @transform_5, window_bounds = array<i64: 128, 128>}, {pipeline_mode = #tpu.pipeline_mode<synchronous>, transform_indices = @transform_6, window_bounds = array<i64: 1, 128>}, {transform_indices = @transform_7, window_bounds = array<i64: 32, 128>}]} {
    %c0 = arith.constant 0 : index
    %c0_0 = arith.constant 0 : index
    %0 = vector.load %arg1[%c0, %c0_0] : memref<32x128xf32, #tpu.memory_space<vmem>>, vector<32x128xf32>
    %c0_1 = arith.constant 0 : index
    %c0_2 = arith.constant 0 : index
    %1 = vector.load %arg2[%c0_1, %c0_2] : memref<128x128xf32, #tpu.memory_space<vmem>>, vector<128x128xf32>
    %cst = arith.constant dense<0.000000e+00> : vector<32x128xf32>
    %2 = tpu.matmul %0, %1, %cst {dimension_numbers = #tpu.dot_dimension_numbers<[1], [0], [0], [1], [0, 0, 1, 1], [], []>} : vector<32x128xf32>, vector<128x128xf32>, vector<32x128xf32> -> vector<32x128xf32>
    %c0_3 = arith.constant 0 : index
    %c0_4 = arith.constant 0 : index
    %3 = vector.load %arg3[%c0_3, %c0_4] : memref<1x128xf32, #tpu.memory_space<vmem>>, vector<1x128xf32>
    %4 = vector.broadcast %3 : vector<1x128xf32> to vector<32x128xf32>
    %5 = arith.addf %2, %4 : vector<32x128xf32>
    %cst_5 = arith.constant 0.000000e+00 : f32
    %6 = vector.broadcast %cst_5 : f32 to vector<32x128xf32>
    %7 = arith.maximumf %5, %6 : vector<32x128xf32>
    %c0_6 = arith.constant 0 : index
    %c0_7 = arith.constant 0 : index
    %8 = vector.load %arg4[%c0_6, %c0_7] : memref<128x128xf32, #tpu.memory_space<vmem>>, vector<128x128xf32>
    %cst_8 = arith.constant dense<0.000000e+00> : vector<32x128xf32>
    %9 = tpu.matmul %7, %8, %cst_8 {dimension_numbers = #tpu.dot_dimension_numbers<[1], [0], [0], [1], [0, 0, 1, 1], [], []>} : vector<32x128xf32>, vector<128x128xf32>, vector<32x128xf32> -> vector<32x128xf32>
    %c0_9 = arith.constant 0 : index
    %c0_10 = arith.constant 0 : index
    %10 = vector.load %arg5[%c0_9, %c0_10] : memref<1x128xf32, #tpu.memory_space<vmem>>, vector<1x128xf32>
    %11 = vector.broadcast %10 : vector<1x128xf32> to vector<32x128xf32>
    %12 = arith.addf %9, %11 : vector<32x128xf32>
    %cst_11 = arith.constant 0.000000e+00 : f32
    %13 = vector.broadcast %cst_11 : f32 to vector<32x128xf32>
    %14 = arith.maximumf %12, %13 : vector<32x128xf32>
    %c0_12 = arith.constant 0 : index
    %c0_13 = arith.constant 0 : index
    %15 = vector.load %arg6[%c0_12, %c0_13] : memref<128x128xf32, #tpu.memory_space<vmem>>, vector<128x128xf32>
    %cst_14 = arith.constant dense<0.000000e+00> : vector<32x128xf32>
    %16 = tpu.matmul %14, %15, %cst_14 {dimension_numbers = #tpu.dot_dimension_numbers<[1], [0], [0], [1], [0, 0, 1, 1], [], []>} : vector<32x128xf32>, vector<128x128xf32>, vector<32x128xf32> -> vector<32x128xf32>
    %c0_15 = arith.constant 0 : index
    %c0_16 = arith.constant 0 : index
    %17 = vector.load %arg7[%c0_15, %c0_16] : memref<1x128xf32, #tpu.memory_space<vmem>>, vector<1x128xf32>
    %18 = vector.broadcast %17 : vector<1x128xf32> to vector<32x128xf32>
    %19 = arith.addf %16, %18 : vector<32x128xf32>
    %cst_17 = arith.constant 0.000000e+00 : f32
    %20 = vector.broadcast %cst_17 : f32 to vector<32x128xf32>
    %21 = arith.maximumf %19, %20 : vector<32x128xf32>
    %c0_18 = arith.constant 0 : index
    %c0_19 = arith.constant 0 : index
    %22 = vector.load %arg8[%c0_18, %c0_19] : memref<32x128xf32, #tpu.memory_space<vmem>>, vector<32x128xf32>
    tpu.vector_store %arg8[%c0_18, %c0_19], %21 {strides = array<i32>} : memref<32x128xf32, #tpu.memory_space<vmem>>, vector<32x128xf32>,
    return
  }
  func.func @transform_0(%arg0: i32) -> (i32, i32) {
    %c0_i32 = arith.constant 0 : i32
    %c0_i32_0 = arith.constant 0 : i32
    return %arg0, %c0_i32 : i32, i32
  }
  func.func @transform_1(%arg0: i32) -> (i32, i32) {
    %c0_i32 = arith.constant 0 : i32
    %c0_i32_0 = arith.constant 0 : i32
    %c0_i32_1 = arith.constant 0 : i32
    return %c0_i32, %c0_i32_0 : i32, i32
  }
  func.func @transform_2(%arg0: i32) -> (i32, i32) {
    %c0_i32 = arith.constant 0 : i32
    %c0_i32_0 = arith.constant 0 : i32
    %c0_i32_1 = arith.constant 0 : i32
    return %c0_i32, %c0_i32_0 : i32, i32
  }
  func.func @transform_3(%arg0: i32) -> (i32, i32) {
    %c0_i32 = arith.constant 0 : i32
    %c0_i32_0 = arith.constant 0 : i32
    %c0_i32_1 = arith.constant 0 : i32
    return %c0_i32, %c0_i32_0 : i32, i32
  }
  func.func @transform_4(%arg0: i32) -> (i32, i32) {
    %c0_i32 = arith.constant 0 : i32
    %c0_i32_0 = arith.constant 0 : i32
    %c0_i32_1 = arith.constant 0 : i32
    return %c0_i32, %c0_i32_0 : i32, i32
  }
  func.func @transform_5(%arg0: i32) -> (i32, i32) {
    %c0_i32 = arith.constant 0 : i32
    %c0_i32_0 = arith.constant 0 : i32
    %c0_i32_1 = arith.constant 0 : i32
    return %c0_i32, %c0_i32_0 : i32, i32
  }
  func.func @transform_6(%arg0: i32) -> (i32, i32) {
    %c0_i32 = arith.constant 0 : i32
    %c0_i32_0 = arith.constant 0 : i32
    %c0_i32_1 = arith.constant 0 : i32
    return %c0_i32, %c0_i32_0 : i32, i32
  }
  func.func @transform_7(%arg0: i32) -> (i32, i32) {
    %c0_i32 = arith.constant 0 : i32
    %c0_i32_0 = arith.constant 0 : i32
    return %arg0, %c0_i32 : i32, i32
  }
}

</mosaic_0001>

<bundles_post_ra>
// kernel: deep_autoencoder_forward.1
= control target key start
LH: loop header
LB: loop body
LE: loop exit
PB: predicated region body
PF: predicated region fallthrough
CT: control target
= control target key end

     0   :  { %12 = vsyncpa [#allocation3], 0  ;;  %s859_s0 = inlined_call_operand.vmem [shape: f32[64,128], index: 0, kind: input, shape index: {}]   ;;  %s860_s1 = inlined_call_operand.vmem [shape: f32[128,128], index: 1, kind: input, shape index: {}]   ;;  %s861_s2 = inlined_call_operand.vmem [shape: f32[1,128], index: 2, kind: input, shape index: {}]   ;;  %s862_s3 = inlined_call_operand.hbm [shape: f32[128,128], index: 3, kind: input, shape index: {}]   ;;  %s863_s4 = inlined_call_operand.vmem [shape: f32[1,128], index: 4, kind: input, shape index: {}]   ;;  %s864_s5 = inlined_call_operand.hbm [shape: f32[128,128], index: 5, kind: input, shape index: {}]   ;;  %s865_s6 = inlined_call_operand.vmem [shape: f32[1,128], index: 6, kind: input, shape index: {}]   ;;  %s866_s7 = inlined_call_operand.vmem [shape: f32[64,128], index: 7, kind: output, shape index: {}]  }
   0x1   :  { %13 = vsyncpa [#allocation5], 0  ;;  %s746_s24 = smov 0  }
   0x2 LB: > { %s219_s27 = sshll.u32 %s862_s3, 4  ;;  %s561_s28 = sadd.s32 4294967295, %s700_s24   ;;  %s700_s24 = sphi %s746_s24, %s19_s24   ;;  %s220_s27 = int_to_ptr.hbm [resolvable:$true] %s219_s27 }
   0x3   : > { %p563_p0 = scmp.ge.s32.totalorder %s700_s24, 1  ;;  %p202_p1 = scmp.lt.s32.totalorder %s700_s24, 3 }
   0x4   : > { %p759_p2 = scmp.eq.s32.totalorder %s561_s28, 0  ;;  %s702_s8 = smov [#allocation2]  }
   0x5   : > { %p763_p3 = pnand %p563_p0, %p202_p1  ;;  %s221_s9 = sshll.u32 %s702_s8, 4  ;;  %s222_s9 = int_to_ptr.vmem [resolvable:$true] %s221_s9 }
   0x6   : > { %s236_s12 = sshll.u32 %s864_s5, 4  ;;  %s703_s13 = smov [#allocation4]   ;;  %s237_s12 = int_to_ptr.hbm [resolvable:$true] %s236_s12 }
   0x7   : > { %p600_p4 = pneg %p763_p3  ;;  %s238_s14 = sshll.u32 %s703_s13, 4  ;;  %s239_s14 = int_to_ptr.vmem [resolvable:$true] %s238_s14 }
   0x8   : > { %s704_s15 = smov 128   ;;  %s705_s16 = smov 8  }
   0x9   : > { %p601_p5 = pnand %p759_p2, %p600_p4  ;;  %266 = sbr.rel (%p763_p3) target bundleno = 470 (0x1d6), region = 48 }
   0xb   : > { %603 = dma.hbm_to_vmem [thread:$0]  (!%p601_p5), %s220_s27, 2048, %s222_s9, [#allocation3], %s704_s15, %s704_s15, %s705_s16  }
   0xc   : > { %606 = dma.hbm_to_vmem [thread:$0]  (!%p601_p5), %s237_s12, 2048, %s239_s14, [#allocation5], %s704_s15, %s704_s15, %s705_s16  }
   0xe   : > { %691 = dma.done.wait (%p759_p2), [#allocation3], 2048  }
   0xf   : > { %693 = vsyncadd (%p759_p2), [#allocation3], 4294965248 }
  0x10   : > { %695 = dma.done.wait (%p759_p2), [#allocation5], 2048  }
  0x11   : > { %697 = vsyncadd (%p759_p2), [#allocation5], 4294965248  ;;  %v335_v0 = vld [vmem:[%s860_s1 + $0x78] sm:$0xff]  ;;  %v334_v1 = vld [vmem:[%s860_s1 + $0x70] sm:$0xff]  ;;  %s570_s12 = sshll.u32 %s561_s28, 2 }
  0x12   : > { %340 = vmatpush.msra.mxu0 %v335_v0  ;;  %576 = vmatpush.msra.mxu3 %v335_v0  ;;  %v333_v2 = vld [vmem:[%s860_s1 + $0x68] sm:$0xff]  ;;  %v332_v3 = vld [vmem:[%s860_s1 + $0x60] sm:$0xff]  ;;  %v331_v4 = vld [vmem:[%s860_s1 + $0x58] sm:$0xff]  ;;  %p305_p6 = scmp.lt.s32.totalorder %s570_s12, 7 }
  0x13   : > { %v330_v5 = vld [vmem:[%s860_s1 + $0x50] sm:$0xff]  ;;  %v329_v6 = vld [vmem:[%s860_s1 + $0x48] sm:$0xff]  ;;  %v328_v7 = vld [vmem:[%s860_s1 + $0x40] sm:$0xff] }
  0x14   : > { %341 = vmatpush.msra.mxu0 %v334_v1  ;;  %577 = vmatpush.msra.mxu3 %v334_v1  ;;  %v327_v8 = vld [vmem:[%s860_s1 + $0x38] sm:$0xff]  ;;  %v326_v9 = vld [vmem:[%s860_s1 + $0x30] sm:$0xff]  ;;  %v325_v12 = vld [vmem:[%s860_s1 + $0x28] sm:$0xff]  ;;  %s870_s12 = smov (!%p305_p6, %s570_s12), 7 }
  0x15   : > { %v388_v10 = vld [vmem:[#allocation2 + $0x78] sm:$0xff]  ;;  %v387_v11 = vld [vmem:[#allocation2 + $0x70] sm:$0xff]  ;;  %v386_v13 = vld [vmem:[#allocation2 + $0x68] sm:$0xff]  ;;  %s571_s22 = sshll.u32 %s870_s12, 3 }
  0x16   : > { %342 = vmatpush.msra.mxu0 %v333_v2  ;;  %578 = vmatpush.msra.mxu3 %v333_v2  ;;  %v324_v14 = vld [vmem:[%s860_s1 + $0x20] sm:$0xff]  ;;  %v323_v16 = vld [vmem:[%s860_s1 + $0x18] sm:$0xff]  ;;  %v322_v18 = vld [vmem:[%s860_s1 + $0x10] sm:$0xff]  ;;  %s308_s8 = scalar_lea.vmem %s859_s0, %s571_s22  ;;  %s314_s19 = scalar_lea.vmem %s866_s7, %s571_s22 }
  0x17   : > { %393 = vmatpush.msra.mxu1 %v388_v10  ;;  %v385_v15 = vld [vmem:[#allocation2 + $0x60] sm:$0xff]  ;;  %v384_v17 = vld [vmem:[#allocation2 + $0x58] sm:$0xff]  ;;  %v383_v19 = vld [vmem:[#allocation2 + $0x50] sm:$0xff] }
  0x18   : > { %343 = vmatpush.msra.mxu0 %v332_v3  ;;  %579 = vmatpush.msra.mxu3 %v332_v3  ;;  %v321_v20 = vld [vmem:[%s860_s1 + $0x8] sm:$0xff]  ;;  %v320_v22 = vld [vmem:[%s860_s1] sm:$0xff]  ;;  %v380_v26 = vld [vmem:[#allocation2 + $0x38] sm:$0xff] }
  0x19   : > { %394 = vmatpush.msra.mxu1 %v387_v11  ;;  %v382_v21 = vld [vmem:[#allocation2 + $0x48] sm:$0xff]  ;;  %v316_v23 = vld [vmem:[%s308_s8] sm:$0xff]  ;;  %v379_v27 = vld [vmem:[#allocation2 + $0x30] sm:$0xff] }
  0x1a   : > { %344 = vmatpush.msra.mxu0 %v331_v4  ;;  %580 = vmatpush.msra.mxu3 %v331_v4  ;;  %v317_v24 = vld [vmem:[%s308_s8 + $0x8] sm:$0xff]  ;;  %v381_v25 = vld [vmem:[#allocation2 + $0x40] sm:$0xff]  ;;  %v318_v29 = vld [vmem:[%s308_s8 + $0x10] sm:$0xff] }
  0x1b   : > { %395 = vmatpush.msra.mxu1 %v386_v13  ;;  %v378_v28 = vld [vmem:[#allocation2 + $0x28] sm:$0xff]  ;;  %v377_v30 = vld [vmem:[#allocation2 + $0x20] sm:$0xff]  ;;  %v376_v31 = vld [vmem:[#allocation2 + $0x18] sm:$0xff] }
  0x1c   : > { %345 = vmatpush.msra.mxu0 %v330_v5  ;;  %581 = vmatpush.msra.mxu3 %v330_v5  ;;  %v319_v32 = vld [vmem:[%s308_s8 + $0x18] sm:$0xff]  ;;  %v375_v33 = vld [vmem:[#allocation2 + $0x10] sm:$0xff]  ;;  %v374_v34 = vld [vmem:[#allocation2 + $0x8] sm:$0xff] }
  0x1d   : > { %396 = vmatpush.msra.mxu1 %v385_v15  ;;  %v373_v35 = vld [vmem:[#allocation2] sm:$0xff]  ;;  %v441_v37 = vld [vmem:[#allocation4 + $0x78] sm:$0xff]  ;;  %v440_v38 = vld [vmem:[#allocation4 + $0x70] sm:$0xff] }
  0x1e   : > { %346 = vmatpush.msra.mxu0 %v329_v6  ;;  %582 = vmatpush.msra.mxu3 %v329_v6  ;;  %v623_v36 = vld [vmem:[%s861_s2] ss:$0 sm:$0xff]  ;;  %v439_v39 = vld [vmem:[#allocation4 + $0x68] sm:$0xff]  ;;  %v437_v44 = vld [vmem:[#allocation4 + $0x58] sm:$0xff] }
  0x1f   : > { %397 = vmatpush.msra.mxu1 %v384_v17  ;;  %446 = vmatpush.msra.mxu2 %v441_v37  ;;  %v438_v42 = vld [vmem:[#allocation4 + $0x60] sm:$0xff]  ;;  %v436_v45 = vld [vmem:[#allocation4 + $0x50] sm:$0xff]  ;;  %v435_v48 = vld [vmem:[#allocation4 + $0x48] sm:$0xff] }
  0x20   : > { %347 = vmatpush.msra.mxu0 %v328_v7  ;;  %583 = vmatpush.msra.mxu3 %v328_v7  ;;  %v434_v50 = vld [vmem:[#allocation4 + $0x40] sm:$0xff]  ;;  %v433_v51 = vld [vmem:[#allocation4 + $0x38] sm:$0xff]  ;;  %v432_v52 = vld [vmem:[#allocation4 + $0x30] sm:$0xff] }
  0x21   : > { %398 = vmatpush.msra.mxu1 %v383_v19  ;;  %447 = vmatpush.msra.mxu2 %v440_v38  ;;  %v431_v55 = vld [vmem:[#allocation4 + $0x28] sm:$0xff]  ;;  %v430_v57 = vld [vmem:[#allocation4 + $0x20] sm:$0xff]  ;;  %v429_v58 = vld [vmem:[#allocation4 + $0x18] sm:$0xff] }
  0x22   : > { %348 = vmatpush.msra.mxu0 %v327_v8  ;;  %584 = vmatpush.msra.mxu3 %v327_v8  ;;  %v428_v62 = vld [vmem:[#allocation4 + $0x10] sm:$0xff]  ;;  %v427_v63 = vld [vmem:[#allocation4 + $0x8] sm:$0xff]  ;;  %v426_v0 = vld [vmem:[#allocation4] sm:$0xff] }
  0x23   : > { %399 = vmatpush.msra.mxu1 %v382_v21  ;;  %448 = vmatpush.msra.mxu2 %v439_v39  ;;  %v624_v1 = vld [vmem:[%s863_s4] ss:$0 sm:$0xff] }
  0x24   : > { %349 = vmatpush.msra.mxu0 %v326_v9  ;;  %585 = vmatpush.msra.mxu3 %v326_v9 }
  0x25   : > { %400 = vmatpush.msra.mxu1 %v381_v25  ;;  %449 = vmatpush.msra.mxu2 %v438_v42 }
  0x26   : > { %350 = vmatpush.msra.mxu0 %v325_v12  ;;  %586 = vmatpush.msra.mxu3 %v325_v12 }
  0x27   : > { %401 = vmatpush.msra.mxu1 %v380_v26  ;;  %450 = vmatpush.msra.mxu2 %v437_v44 }
  0x28   : > { %351 = vmatpush.msra.mxu0 %v324_v14  ;;  %587 = vmatpush.msra.mxu3 %v324_v14  ;;  %v625_v14 = vld [vmem:[%s865_s6] ss:$0 sm:$0xff] }
  0x29   : > { %402 = vmatpush.msra.mxu1 %v379_v27  ;;  %451 = vmatpush.msra.mxu2 %v436_v45 }
  0x2a   : > { %352 = vmatpush.msra.mxu0 %v323_v16  ;;  %588 = vmatpush.msra.mxu3 %v323_v16 }
  0x2b   : > { %403 = vmatpush.msra.mxu1 %v378_v28  ;;  %452 = vmatpush.msra.mxu2 %v435_v48 }
  0x2c   : > { %353 = vmatpush.msra.mxu0 %v322_v18  ;;  %589 = vmatpush.msra.mxu3 %v322_v18 }
  0x2d   : > { %404 = vmatpush.msra.mxu1 %v377_v30  ;;  %453 = vmatpush.msra.mxu2 %v434_v50 }
  0x2e   : > { %354 = vmatpush.msra.mxu0 %v321_v20  ;;  %590 = vmatpush.msra.mxu3 %v321_v20 }
  0x2f   : > { %405 = vmatpush.msra.mxu1 %v376_v31  ;;  %454 = vmatpush.msra.mxu2 %v433_v51 }
  0x30   : > { %355 = vmatpush.msra.mxu0 %v320_v22  ;;  %591 = vmatpush.msra.mxu3 %v320_v22 }
  0x31   : > { %356 = vmatmul.f32.vlgmr.msra.gmra.mxu0 %v316_v23  ;;  %359 = vmatmul.f32.vlgmr.msra.gmra.mxu3 %v317_v24 }
  0x32   : > { %406 = vmatpush.msra.mxu1 %v375_v33  ;;  %455 = vmatpush.msra.mxu2 %v432_v52 }
  0x34   : > { %407 = vmatpush.msra.mxu1 %v374_v34  ;;  %456 = vmatpush.msra.mxu2 %v431_v55 }
  0x36   : > { %408 = vmatpush.msra.mxu1 %v373_v35  ;;  %457 = vmatpush.msra.mxu2 %v430_v57 }
  0x38   : > { %458 = vmatpush.msra.mxu2 %v429_v58 }
  0x39   : > { %362 = vmatmul.f32.gmra.mxu3 %v318_v29 }
  0x3a   : > { %459 = vmatpush.msra.mxu2 %v428_v62 }
  0x3c   : > { %460 = vmatpush.msra.mxu2 %v427_v63 }
  0x3e   : > { %461 = vmatpush.msra.mxu2 %v426_v0 }
  0x41   : > { %365 = vmatmul.f32.gmra.mxu3 %v319_v32 }
  0xae   : > { %v357_v40 = vpop.f32.mrf.mxu0 }
  0xaf   : > { %v358_v41 = vadd.f32 %v623_v36, %v357_v40 }
  0xb1   : > { %v369_v43 = vmax.f32 %v358_v41, 0.0 }
  0xb3   : > { %409 = vmatmul.f32.vlgmr.msra.gmra.mxu1 %v369_v43 }
  0xb4   : > { %v360_v46 = vpop.f32.mrf.mxu3 }
  0xb5   : > { %v361_v47 = vadd.f32 %v623_v36, %v360_v46 }
  0xb7   : > { %v370_v49 = vmax.f32 %v361_v47, 0.0 }
  0xbb   : > { %412 = vmatmul.f32.gmra.mxu1 %v370_v49 }
  0xbc   : > { %v363_v53 = vpop.f32.mrf.mxu3 }
  0xbd   : > { %v364_v54 = vadd.f32 %v623_v36, %v363_v53 }
  0xbf   : > { %v371_v56 = vmax.f32 %v364_v54, 0.0 }
  0xc3   : > { %415 = vmatmul.f32.gmra.mxu1 %v371_v56 }
  0xc4   : > { %v366_v59 = vpop.f32.mrf.mxu3 }
  0xc5   : > { %v367_v60 = vadd.f32 %v623_v36, %v366_v59 }
  0xc7   : > { %v372_v61 = vmax.f32 %v367_v60, 0.0 }
  0xcb   : > { %418 = vmatmul.f32.gmra.mxu1 %v372_v61 }
 0x130   : > { %v410_v2 = vpop.f32.mrf.mxu1 }
 0x131   : > { %v411_v3 = vadd.f32 %v624_v1, %v410_v2 }
 0x133   : > { %v422_v4 = vmax.f32 %v411_v3, 0.0 }
 0x135   : > { %462 = vmatmul.f32.vlgmr.msra.gmra.mxu2 %v422_v4 }
 0x138   : > { %v413_v5 = vpop.f32.mrf.mxu1 }
 0x139   : > { %v414_v6 = vadd.f32 %v624_v1, %v413_v5 }
 0x13b   : > { %v423_v7 = vmax.f32 %v414_v6, 0.0 }
 0x13d   : > { %465 = vmatmul.f32.gmra.mxu2 %v423_v7 }
 0x140   : > { %v416_v8 = vpop.f32.mrf.mxu1 }
 0x141   : > { %v417_v9 = vadd.f32 %v624_v1, %v416_v8 }
 0x143   : > { %v424_v10 = vmax.f32 %v417_v9, 0.0 }
 0x145   : > { %468 = vmatmul.f32.gmra.mxu2 %v424_v10 }
 0x148   : > { %v419_v11 = vpop.f32.mrf.mxu1 }
 0x149   : > { %v420_v12 = vadd.f32 %v624_v1, %v419_v11 }
 0x14b   : > { %v425_v13 = vmax.f32 %v420_v12, 0.0 }
 0x14d   : > { %471 = vmatmul.f32.gmra.mxu2 %v425_v13 }
 0x1b8   : > { %v463_v15 = vpop.f32.mrf.mxu2 }
 0x1b9   : > { %v464_v16 = vadd.f32 %v625_v14, %v463_v15 }
 0x1bb   : > { %v475_v17 = vmax.f32 %v464_v16, 0.0 }
 0x1bd   : > { %479 = vst [vmem:[%s314_s19] sm:$0xff] %v475_v17 }
 0x1c0   : > { %v466_v18 = vpop.f32.mrf.mxu2 }
 0x1c1   : > { %v467_v19 = vadd.f32 %v625_v14, %v466_v18 }
 0x1c3   : > { %v476_v20 = vmax.f32 %v467_v19, 0.0 }
 0x1c5   : > { %480 = vst [vmem:[%s314_s19 + $0x8] sm:$0xff] %v476_v20 }
 0x1c8   : > { %v469_v21 = vpop.f32.mrf.mxu2 }
 0x1c9   : > { %v470_v22 = vadd.f32 %v625_v14, %v469_v21 }
 0x1cb   : > { %v477_v23 = vmax.f32 %v470_v22, 0.0 }
 0x1cd   : > { %481 = vst [vmem:[%s314_s19 + $0x10] sm:$0xff] %v477_v23 }
 0x1d0   : > { %v472_v24 = vpop.f32.mrf.mxu2 }
 0x1d1   : > { %v473_v25 = vadd.f32 %v625_v14, %v472_v24 }
 0x1d3   : > { %v478_v26 = vmax.f32 %v473_v25, 0.0 }
 0x1d5   : > { %482 = vst [vmem:[%s314_s19 + $0x18] sm:$0xff] %v478_v26 }
 0x1d6 PF: > { %s19_s24 = sadd.s32 1, %s700_s24  }
 0x1d7   : > { %p16_p7 = scmp.ge.s32.totalorder %s19_s24, 4  }
 0x1d9   :  { %18 = sbr.rel (!%p16_p7) target bundleno = 2 (0x2), region = 87 }
 0x1de   :  { %505 = vsyncpa [#allocation3], 1 }
 0x1df   :  { %507 = vsyncpa [#allocation3 + $0x1], 1 }
 0x1e0   :  { %508 = vsyncpa [#allocation5], 1 }

</bundles_post_ra>
